<compile_context>
chip_gen: v5e
topology: v5e:2x2
jax: 0.10.0
libtpu: 0.0.40
codegen_flags: <defaults>
</compile_context>

<pallas_src>
from functools import partial

import jax
import jax.numpy as jnp
from jax import lax
from jax.experimental import pallas as pl
from jax.experimental.pallas import tpu as pltpu


def _groupnorm1_kernel(x_ref, g_ref, b_ref, o_ref, *, eps, inv_m):
    # x_ref: (C, HW)  one batch element; channels on sublanes, spatial on lanes
    # g_ref: (C, 1)   per-channel scale (gamma)
    # b_ref: (C, 1)   per-channel shift (beta)
    # o_ref: (C, HW)  normalized output
    x = x_ref[...].astype(jnp.float32)
    mean = jnp.sum(x) * inv_m                     # full (C*HW) reduction, XLU
    xc = x - mean
    var = jnp.sum(xc * xc) * inv_m                # biased variance (matches PyTorch GN)
    rstd = lax.rsqrt(var + eps)                   # EUP
    y = xc * rstd * g_ref[...] + b_ref[...]       # (C,1) broadcasts along lanes
    o_ref[...] = y.astype(o_ref.dtype)


def group_norm1(x_nchw, gamma, beta, *, eps=1e-5):
    """nn.GroupNorm(1, C) forward: per-sample norm over (C, H, W) + per-channel affine.

    x_nchw : (N, C, H, W)
    gamma  : (C,)
    beta   : (C,)
    returns (N, C, H, W)
    """
    N, C, H, W = x_nchw.shape
    HW = H * W

    x3 = x_nchw.reshape(N, C, HW)                 # pure reshape, lane-dense last dim
    g2 = gamma.reshape(C, 1).astype(jnp.float32)
    b2 = beta.reshape(C, 1).astype(jnp.float32)

    out = pl.pallas_call(
        partial(_groupnorm1_kernel, eps=float(eps), inv_m=1.0 / (C * HW)),
        out_shape=jax.ShapeDtypeStruct((N, C, HW), x_nchw.dtype),
        grid=(N,),
        in_specs=[
            pl.BlockSpec((None, C, HW), lambda n: (n, 0, 0)),
            pl.BlockSpec((C, 1), lambda n: (0, 0)),
            pl.BlockSpec((C, 1), lambda n: (0, 0)),
        ],
        out_specs=pl.BlockSpec((None, C, HW), lambda n: (n, 0, 0)),
        compiler_params=pltpu.CompilerParams(dimension_semantics=("parallel",)),
    )(x3, g2, b2)

    return out.reshape(N, C, H, W)


def pre_norm_forward(x_nchw, gamma, beta, fn=None, *, eps=1e-5):
    """PreNorm.forward: fn(GroupNorm(1, C)(x)).

    # TODO(synk): `self.fn` is an arbitrary wrapped nn.Module chosen at construction
    # time; it is applied here as a user-supplied JAX callable (identity by default)
    # rather than being lowered into the Pallas kernel.
    """
    y = group_norm1(x_nchw, gamma, beta, eps=eps)
    if fn is None:
        return y
    return fn(y)


def _reference(x_nchw, gamma, beta, eps=1e-5):
    """Pure-jnp reference for nn.GroupNorm(1, C)."""
    mean = jnp.mean(x_nchw, axis=(1, 2, 3), keepdims=True)
    var = jnp.mean((x_nchw - mean) ** 2, axis=(1, 2, 3), keepdims=True)
    xn = (x_nchw - mean) / jnp.sqrt(var + eps)
    return xn * gamma[None, :, None, None] + beta[None, :, None, None]


if __name__ == "__main__":
    N, dim, H, W = 2, 4, 16, 16

    key = jax.random.PRNGKey(0)
    kx, kg, kb = jax.random.split(key, 3)
    x = jax.random.normal(kx, (N, dim, H, W), dtype=jnp.float32)
    # GroupNorm affine params (PyTorch default init is gamma=1, beta=0; use random
    # values here so the affine path is actually exercised).
    gamma = 1.0 + 0.1 * jax.random.normal(kg, (dim,), dtype=jnp.float32)
    beta = 0.1 * jax.random.normal(kb, (dim,), dtype=jnp.float32)

    y = jax.block_until_ready(pre_norm_forward(x, gamma, beta, fn=lambda t: t))
    assert y.shape == (N, dim, H, W), y.shape

    y_ref = jax.block_until_ready(_reference(x, gamma, beta))
    err = float(jnp.max(jnp.abs(y - y_ref)))
    assert jnp.allclose(y, y_ref, atol=1e-4, rtol=1e-4), err

    print("KERNEL_OK")
</pallas_src>

<mosaic_0001>
module attributes {stable_mosaic.version = 11 : i64} {
  func.func @_groupnorm1_kernel(%arg0: i32, %arg1: memref<1x4x256xf32, #tpu.memory_space<vmem>>, %arg2: memref<4x1xf32, #tpu.memory_space<vmem>>, %arg3: memref<4x1xf32, #tpu.memory_space<vmem>>, %arg4: memref<1x4x256xf32, #tpu.memory_space<vmem>>) attributes {dimension_semantics = [#tpu.dimension_semantics<parallel>], iteration_bounds = array<i64: 2>, scalar_prefetch = 0 : i64, scratch_operands = 0 : i64, tpu.core_type = #tpu.core_type<tc>, window_params = [{transform_indices = @transform_0, window_bounds = array<i64: 1, 4, 256>}, {pipeline_mode = #tpu.pipeline_mode<synchronous>, transform_indices = @transform_1, window_bounds = array<i64: 4, 1>}, {pipeline_mode = #tpu.pipeline_mode<synchronous>, transform_indices = @transform_2, window_bounds = array<i64: 4, 1>}, {transform_indices = @transform_3, window_bounds = array<i64: 1, 4, 256>}]} {
    %c0 = arith.constant 0 : index
    %c0_0 = arith.constant 0 : index
    %c0_1 = arith.constant 0 : index
    %0 = vector.load %arg1[%c0, %c0_0, %c0_1] : memref<1x4x256xf32, #tpu.memory_space<vmem>>, vector<1x4x256xf32>
    %1 = vector.shape_cast %0 : vector<1x4x256xf32> to vector<4x256xf32>
    %2 = vector.shape_cast %1 : vector<4x256xf32> to vector<1x4x256xf32>
    %cst = arith.constant dense<0.000000e+00> : vector<1xf32>
    %3 = vector.multi_reduction <add>, %2, %cst [1, 2] : vector<1x4x256xf32> to vector<1xf32>
    %4 = vector.shape_cast %3 : vector<1xf32> to vector<1x1x1xf32>
    %5 = vector.extract %4[0, 0, 0] : f32 from vector<1x1x1xf32>
    %cst_2 = arith.constant 9.765625E-4 : f32
    %6 = arith.mulf %5, %cst_2 : f32
    %7 = vector.broadcast %6 : f32 to vector<4x256xf32>
    %8 = arith.subf %1, %7 : vector<4x256xf32>
    %9 = arith.mulf %8, %8 : vector<4x256xf32>
    %10 = vector.shape_cast %9 : vector<4x256xf32> to vector<1x4x256xf32>
    %cst_3 = arith.constant dense<0.000000e+00> : vector<1xf32>
    %11 = vector.multi_reduction <add>, %10, %cst_3 [1, 2] : vector<1x4x256xf32> to vector<1xf32>
    %12 = vector.shape_cast %11 : vector<1xf32> to vector<1x1x1xf32>
    %13 = vector.extract %12[0, 0, 0] : f32 from vector<1x1x1xf32>
    %cst_4 = arith.constant 9.765625E-4 : f32
    %14 = arith.mulf %13, %cst_4 : f32
    %cst_5 = arith.constant 9.99999974E-6 : f32
    %15 = arith.addf %14, %cst_5 : f32
    %16 = math.rsqrt %15 : f32
    %17 = vector.broadcast %16 : f32 to vector<4x256xf32>
    %18 = arith.mulf %8, %17 : vector<4x256xf32>
    %c0_6 = arith.constant 0 : index
    %c0_7 = arith.constant 0 : index
    %19 = vector.load %arg2[%c0_6, %c0_7] : memref<4x1xf32, #tpu.memory_space<vmem>>, vector<4x1xf32>
    %20 = vector.broadcast %19 : vector<4x1xf32> to vector<4x256xf32>
    %21 = arith.mulf %18, %20 : vector<4x256xf32>
    %c0_8 = arith.constant 0 : index
    %c0_9 = arith.constant 0 : index
    %22 = vector.load %arg3[%c0_8, %c0_9] : memref<4x1xf32, #tpu.memory_space<vmem>>, vector<4x1xf32>
    %23 = vector.broadcast %22 : vector<4x1xf32> to vector<4x256xf32>
    %24 = arith.addf %21, %23 : vector<4x256xf32>
    %c0_10 = arith.constant 0 : index
    %c0_11 = arith.constant 0 : index
    %c0_12 = arith.constant 0 : index
    %25 = vector.load %arg4[%c0_10, %c0_11, %c0_12] : memref<1x4x256xf32, #tpu.memory_space<vmem>>, vector<1x4x256xf32>
    %26 = vector.shape_cast %25 : vector<1x4x256xf32> to vector<4x256xf32>
    %27 = vector.shape_cast %24 : vector<4x256xf32> to vector<1x4x256xf32>
    tpu.vector_store %arg4[%c0_10, %c0_11, %c0_12], %27 {strides = array<i32>} : memref<1x4x256xf32, #tpu.memory_space<vmem>>, vector<1x4x256xf32>,
    return
  }
  func.func @transform_0(%arg0: i32) -> (i32, i32, i32) {
    %c0_i32 = arith.constant 0 : i32
    %c0_i32_0 = arith.constant 0 : i32
    %c0_i32_1 = arith.constant 0 : i32
    return %arg0, %c0_i32, %c0_i32_0 : i32, i32, i32
  }
  func.func @transform_1(%arg0: i32) -> (i32, i32) {
    %c0_i32 = arith.constant 0 : i32
    %c0_i32_0 = arith.constant 0 : i32
    %c0_i32_1 = arith.constant 0 : i32
    return %c0_i32, %c0_i32_0 : i32, i32
  }
  func.func @transform_2(%arg0: i32) -> (i32, i32) {
    %c0_i32 = arith.constant 0 : i32
    %c0_i32_0 = arith.constant 0 : i32
    %c0_i32_1 = arith.constant 0 : i32
    return %c0_i32, %c0_i32_0 : i32, i32
  }
  func.func @transform_3(%arg0: i32) -> (i32, i32, i32) {
    %c0_i32 = arith.constant 0 : i32
    %c0_i32_0 = arith.constant 0 : i32
    %c0_i32_1 = arith.constant 0 : i32
    return %arg0, %c0_i32, %c0_i32_0 : i32, i32, i32
  }
}

</mosaic_0001>

<bundles_post_ra>
// kernel: tpu_custom_call.1
= control target key start
LH: loop header
LB: loop body
LE: loop exit
PB: predicated region body
PF: predicated region fallthrough
CT: control target
= control target key end

     0   :  { %8 = vsyncpa [#allocation3], 0  ;;  %s692_s0 = inlined_call_operand.hbm [shape: f32[2,4,256], index: 0, kind: input, shape index: {}]   ;;  %s693_s1 = inlined_call_operand.vmem [shape: f32[4,1], index: 1, kind: input, shape index: {}]   ;;  %s694_s2 = inlined_call_operand.vmem [shape: f32[4,1], index: 2, kind: input, shape index: {}]   ;;  %s695_s3 = inlined_call_operand.hbm [shape: f32[2,4,256], index: 3, kind: output, shape index: {}]  }
   0x1   :  { %10 = vsyncpa [#allocation3 + $0x1], 0 }
   0x2   :  { %11 = vsyncpa [#allocation4], 0 }
   0x3   :  { %13 = vsyncpa [#allocation4 + $0x1], 0  ;;  %s551_s12 = smov 0   ;;  %s553_s13 = smov 0  }
   0x4   :  { %s555_s14 = smov 0   ;;  %s557_s15 = smov 0  }
   0x5 LB: > { %s572_s16 = sadd.s32 4294967295, %s527_s15   ;;  %s357_s17 = sadd.s32 4294967294, %s527_s15   ;;  %s527_s15 = sphi %s557_s15, %s705_s15   ;;  %s523_s14 = sphi %s555_s14, %s704_s14   ;;  %s519_s13 = sphi %s553_s13, %s703_s13   ;;  %s515_s12 = sphi %s551_s12, %s702_s12  }
   0x6   : > { %s576_s18 = sadd.s32 1, %s527_s15   ;;  %s26_s19 = sadd.s32 1, %s523_s14 }
   0x7   : > { %s23_s20 = ssub.s32 %s527_s15, %s576_s18  ;;  %p33_p0 = scmp.ne.s32.totalorder %s523_s14, %s519_s13 }
   0x8   : > { %p24_p1 = scmp.eq.s32.totalorder %s23_s20, 0  ;;  %p34_p2 = scmp.eq.s32.totalorder %s527_s15, 0 }
   0x9   : > { %p39_p3 = scmp.ne.s32.totalorder %s519_s13, %s515_s12  ;;  %p40_p4 = scmp.eq.s32.totalorder %s572_s16, 0 }
   0xa   : > { %s588_s21 = scalar_select %p24_p1, %s523_s14, %s26_s19  }
   0xb   : > { %p590_p5 = por %p34_p2, %p33_p0  ;;  %p594_p6 = por %p40_p4, %p39_p3 }
   0xc   : > { %p105_p7 = scmp.eq.s32.totalorder %s572_s16, 1  ;;  %p111_p8 = scmp.eq.s32.totalorder %s357_s17, 1 }
   0xd   : > { %p391_p10 = scmp.lt.s32.totalorder %s527_s15, 2  ;;  %s137_s26 = sand.u32 1, %s523_s14  }
   0xe   : > { %p601_p11 = por %p105_p7, %p33_p0  ;;  %p605_p12 = por %p111_p8, %p39_p3 }
   0xf   : > { %s371_s27 = sshll.u32 %s527_s15, 3  ;;  %s360_s28 = sshll.u32 %s137_s26, 3 }
  0x10   : > { %s146_s4 = scalar_lea.hbm %s692_s0, %s371_s27  ;;  %s141_s6 = scalar_lea.vmem [#allocation2], %s360_s28 }
  0x11   : > { %s148_s5 = sshll.u32 %s146_s4, 4  ;;  %s150_s7 = sshll.u32 %s141_s6, 4  ;;  %s149_s5 = int_to_ptr.hbm [resolvable:$true] %s148_s5  ;;  %s151_s7 = int_to_ptr.vmem [resolvable:$true] %s150_s7 }
  0x12   : > { %p616_p13 = pnand %p391_p10, %p590_p5  ;;  %p363_p0 = scmp.ge.s32.totalorder %s527_s15, 1 }
  0x13   : > { %p155_p1 = scmp.lt.s32.totalorder %s527_s15, 3  ;;  %s138_s9 = scalar_lea.sflag [#allocation3], %s137_s26 }
  0x14   : > { %s431_s10 = sshra.s32 %s149_s5, 4  ;;  %p435_p3 = pneg %p616_p13  ;;  %s432_s10 = int_to_ptr.hbm [resolvable:$true] %s431_s10 }
  0x15   : > { %s433_s11 = scalar_lea.hbm %s432_s10, 8  ;;  %s438_s20 = scalar_lea.hbm %s692_s0, 16 }
  0x16   : > { %p434_p2 = scmp.ne.s32.totalorder %s432_s10, %s433_s11  ;;  %p439_p5 = scmp.lt.s32.totalorder %s432_s10, %s692_s0 }
  0x17   : > { %p440_p8 = scmp.lt.s32.totalorder %s438_s20, %s433_s11 }
  0x18   : > { %p436_p4 = pnand %p435_p3, %p434_p2 }
  0x19   : > { %p441_p10 = por %p440_p8, %p439_p5 }
  0x1a   : > { %p437_p7 = pneg %p436_p4 }
  0x1c   : > { %p442_p9 = pnand %p441_p10, %p437_p7 }
  0x1e   : > { %445 = shalt.err (!%p442_p9)
}
  0x1f   : > { %386 = dma.hbm_to_vmem [thread:$0]  (!%p616_p13), %s149_s5, 128, %s151_s7, %s138_s9  }
  0x20   : > { %p156_p2 = pnand %p363_p0, %p155_p1 }
  0x21   : > { %s637_s26 = sand.u32 (!%p156_p2), 1, %s519_s13  }
  0x22   : > { %159 = sbr.rel (%p156_p2) target bundleno = 509 (0x1fd), region = 32  ;;  %s364_s28 = sshll.u32 (!%p156_p2), %s637_s26, 3 }
  0x23   : > { %s162_s29 = scalar_lea.sflag (!%p156_p2), [#allocation3], %s637_s26  ;;  %s165_s30 = scalar_lea.vmem (!%p156_p2), [#allocation2], %s364_s28 }
  0x27   : > { %506 = dma.done.wait (%p594_p6), %s162_s29, 128  }
  0x28   : > { %508 = vsyncadd (%p594_p6), %s162_s29, 4294967168  ;;  %v189_v0 = vld [vmem:[%s165_s30] sm:$0xff]  ;;  %vm196_vm0 = vcmask 1043456   ;;  %v529_v21 = vmov 0   ;;  %v247_v22 = vld [vmem:[%s693_s1] sm:$0xf] }
  0x29   : > { %191 = vst [vmem:[#allocation1] ss:$2 sm:$0xff] %v189_v0  ;;  %427 = vset.pattern.permute.xlu1 %v529_v21  ;;  %428 = vset.pattern.permute.xlu0 %v529_v21  ;;  %v258_v23 = vld [vmem:[%s694_s2] sm:$0xf]  ;;  %v530_v40 = vmov 839922192  }
  0x2a   : > { %250 = vperm.xlu1 %427, %v247_v22   ;;  %v253_v41 = vunpack.c.l.s4 %v530_v40  ;;  %s372_s17 = sshll.u32 %s572_s16, 3  ;;  %s188_s29 = scalar_lea.vmem [#allocation5], %s364_s28 }
  0x2b   : > { %s282_s27 = scalar_lea.hbm %s695_s3, %s372_s17  ;;  %s284_s30 = sshll.u32 %s188_s29, 4  ;;  %s285_s30 = int_to_ptr.vmem [resolvable:$true] %s284_s30 }
  0x2c   : > { %v254_v42 = vunpack.c.0.s8 %v253_v41  ;;  %s271_s16 = scalar_lea.sflag [#allocation4], %s637_s26  ;;  %s481_s28 = scalar_lea.hbm %s695_s3, 16 }
  0x30   : > { %v192_v1 = vld.sshfl [vmem:[#allocation1] sm:$0xff pattern:$0x75316420]  ;;  %v193_v2 = vld.sshfl [vmem:[#allocation1 + $0x8] sm:$0xff pattern:$0x75316420] }
  0x31   : > { %v197_v3 = vsel %vm196_vm0, %v192_v1, 0.0  ;;  %v198_v4 = vsel %vm196_vm0, %v193_v2, 0.0 }
  0x32   : > { %v199_v5 = vadd.f32 %v198_v4, %v197_v3  ;;  %261 = vperm.xlu1 %427, %v258_v23  }
  0x34   : > { %200 = vadd.xlane.f32.xlu0 %v199_v5 }
  0x9c   : > { %v251_v39 = vpop.permute.xlu1 %250 }
  0x9d   : > { %v255_v45 = vperm.slane %v251_v39, %v254_v42 }
  0xa4   : > { %v262_v43 = vpop.permute.xlu1 %261 }
  0xa5   : > { %v266_v47 = vperm.slane %v262_v43, %v254_v42 }
  0xa7   : > { %v201_v6 = vpop.xlane.xlu0 %200 }
  0xa8   : > { %v202_v7 = vrot.slane %v201_v6, 4 }
  0xaa   : > { %v203_v8 = vadd.f32 %v202_v7, %v201_v6 }
  0xac   : > { %v204_v9 = vrot.slane %v203_v8, 2 }
  0xae   : > { %v205_v10 = vadd.f32 %v204_v9, %v203_v8 }
  0xb0   : > { %v206_v11 = vrot.slane %v205_v10, 1 }
  0xb2   : > { %v207_v12 = vadd.f32 %v206_v11, %v205_v10 }
  0xb4   : > { %373 = vpush %v207_v12 }
  0xe5   : > { %s374_s23 = spop %373 }
  0xe6   : > { %s209_s4 = smul.f32 0.0009765625, %s374_s23  ;;  %s286_s23 = sshll.u32 %s282_s27, 4  ;;  %s287_s23 = int_to_ptr.hbm [resolvable:$true] %s286_s23 }
  0xe8   : > { %v210_v13 = vstv %s209_s4  ;;  %s475_s4 = sshra.s32 %s287_s23, 4  ;;  %s476_s4 = int_to_ptr.hbm [resolvable:$true] %s475_s4 }
  0xe9   : > { %v211_v14 = vsub.f32 %v189_v0, %v210_v13  ;;  %s477_s5 = scalar_lea.hbm %s476_s4, 8  ;;  %p482_p0 = scmp.lt.s32.totalorder %s476_s4, %s695_s3 }
  0xea   : > { %p478_p6 = scmp.ne.s32.totalorder %s476_s4, %s477_s5  ;;  %p483_p1 = scmp.lt.s32.totalorder %s481_s28, %s477_s5 }
  0xeb   : > { %v212_v15 = vmul.f32 %v211_v14, %v211_v14 }
  0xec   : > { %p479_p9 = pnand %p478_p6, %p601_p11  ;;  %p484_p3 = por %p483_p1, %p482_p0 }
  0xed   : > { %214 = vst [vmem:[#allocation1] ss:$2 sm:$0xff] %v212_v15 }
  0xee   : > { %p480_p13 = pneg %p479_p9 }
  0xf0   : > { %p485_p4 = pnand %p484_p3, %p480_p13 }
  0xf4   : > { %v215_v16 = vld.sshfl [vmem:[#allocation1] sm:$0xff pattern:$0x75316420]  ;;  %v216_v17 = vld.sshfl [vmem:[#allocation1 + $0x8] sm:$0xff pattern:$0x75316420] }
  0xf5   : > { %v219_v18 = vsel %vm196_vm0, %v215_v16, 0.0  ;;  %v220_v19 = vsel %vm196_vm0, %v216_v17, 0.0 }
  0xf6   : > { %v221_v20 = vadd.f32 %v220_v19, %v219_v18 }
  0xf8   : > { %222 = vadd.xlane.f32.xlu0 %v221_v20 }
 0x16b   : > { %v223_v24 = vpop.xlane.xlu0 %222 }
 0x16c   : > { %v224_v25 = vrot.slane %v223_v24, 4 }
 0x16e   : > { %v225_v26 = vadd.f32 %v224_v25, %v223_v24 }
 0x170   : > { %v226_v27 = vrot.slane %v225_v26, 2 }
 0x172   : > { %v227_v28 = vadd.f32 %v226_v27, %v225_v26 }
 0x174   : > { %v228_v29 = vrot.slane %v227_v28, 1 }
 0x176   : > { %v229_v30 = vadd.f32 %v228_v29, %v227_v28 }
 0x178   : > { %375 = vpush %v229_v30 }
 0x1a9   : > { %s376_s9 = spop %375 }
 0x1aa   : > { %s231_s10 = smul.f32 0.0009765625, %s376_s9 }
 0x1ac   : > { %s232_s11 = sadd.f32 1e-05, %s231_s10 }
 0x1ae   : > { %v233_v31 = vstv %s232_s11 }
 0x1af   : > { %429 = vrsqrt.f32 %v233_v31  ;;  %vm240_vm2 = vweird.f32 %v233_v31 }
 0x1b5   : > { %v430_v32 = vpop.eup %429 }
 0x1b6   : > { %v235_v33 = vmul.f32 %v430_v32, %v233_v31  ;;  %vm241_vm1 = vweird.f32 %v430_v32 }
 0x1b7   : > { %vm242_vm3 = vmor %vm240_vm2, %vm241_vm1 }
 0x1b8   : > { %v236_v34 = vmul.f32 %v430_v32, %v235_v33 }
 0x1ba   : > { %v237_v35 = vmul.f32 0.5, %v236_v34 }
 0x1bc   : > { %v238_v36 = vsub.f32 1.5, %v237_v35 }
 0x1be   : > { %v239_v37 = vmul.f32 %v430_v32, %v238_v36 }
 0x1c0   : > { %v243_v38 = vsel %vm242_vm3, %v430_v32, %v239_v37 }
 0x1c1   : > { %377 = vpush %v243_v38 }
 0x1f2   : > { %s378_s19 = spop %377 }
 0x1f3   : > { %v245_v44 = vstv %s378_s19 }
 0x1f4   : > { %v246_v46 = vmul.f32 %v245_v44, %v211_v14 }
 0x1f6   : > { %v257_v48 = vmul.f32 %v255_v45, %v246_v46 }
 0x1f8   : > { %v268_v49 = vadd.f32 %v266_v47, %v257_v48 }
 0x1fa   : > { %269 = vst [vmem:[%s188_s29] sm:$0xff] %v268_v49 }
 0x1fb   : > { %488 = shalt.err (!%p485_p4)
}
 0x1fc   : > { %381 = dma.vmem_to_hbm [thread:$0]  (%p601_p11), %s285_s30, 128, %s287_s23, %s271_s16  }
 0x1fd PF: > { %s298_s26 = sand.u32 1, %s515_s12   ;;  %p701_p7 = scmp.ge.s32.totalorder %s527_s15, 2 }
 0x1fe   : > { %s299_s10 = scalar_lea.sflag [#allocation4], %s298_s26 }
 0x1ff   : > { %p388_p5 = pnand %p701_p7, %p605_p12 }
 0x201   : > { %p389_p8 = pneg %p388_p5 }
 0x203   : > { %510 = dma.done.wait (%p389_p8), %s299_s10, 128  }
 0x204   : > { %512 = vsyncadd (%p389_p8), %s299_s10, 4294967168  ;;  %p16_p10 = scmp.ge.s32.totalorder %s576_s18, 4   ;;  %s702_s12 = smov %s519_s13 }
 0x205   : > { %s703_s13 = smov %s523_s14  ;;  %s704_s14 = smov %s588_s21 }
 0x206   : > { %s705_s15 = smov %s576_s18  ;;  %18 = sbr.rel (!%p16_p10) target bundleno = 5 (0x5), region = 77 }
 0x20b   :  { %305 = vsyncpa [#allocation3], 1 }
 0x20c   :  { %307 = vsyncpa [#allocation3 + $0x1], 1 }
 0x20d   :  { %308 = vsyncpa [#allocation4], 1 }
 0x20e   :  { %310 = vsyncpa [#allocation4 + $0x1], 1 }

</bundles_post_ra>
